<compile_context>
chip_gen: v7x
topology: tpu7x:2x2x1
jax: 0.10.0
libtpu: 0.0.40
codegen_flags: <defaults>
</compile_context>

<pallas_src>
import functools

import jax
import jax.numpy as jnp
import numpy as np
from jax.experimental import pallas as pl
from jax.experimental.pallas import tpu as pltpu


def _round_up(x, m):
    return ((x + m - 1) // m) * m


# ----------------------------- Pallas kernel -------------------------------

def _ardae_fwd_kernel(
    slab_ref,              # (TN, 2*ke+1) f32  packed [x | ctx | 0 | eps | 0 | std]
    w_enc_ref, b_enc_ref,  # (ke, HE) bf16, (1, HE) f32   block-diag fused encoder
    w1_ref, w1_std_ref, b1_ref,  # (HE, HP) bf16, (1, HP) f32, (1, HP) f32
    w2_ref, b2_ref,        # (HP, DO) bf16, (1, DO) f32
    psum_ref,              # (1, 8, DO) f32  per-tile partial sum of squared error
    *, d_in, ke, d_out_pad,
):
    slab = slab_ref[...]                                  # (TN, 2*ke+1) f32
    tn = slab.shape[0]

    std = slab[:, 2 * ke:2 * ke + 1]                      # (TN, 1)
    eps = slab[:, ke:ke + d_in]                           # (TN, D_in)
    # [x_bar | ctx | 0] = [x | ctx | 0] + std * [eps | 0]   (add_gaussian_noise)
    enc_in = slab[:, 0:ke] + std * slab[:, ke:2 * ke]     # (TN, ke) f32

    # Fused inp_encode + ctx_encode: one block-diagonal bf16 matmul -> [inp | ctx_enc | 0]
    enc = jnp.tanh(
        jnp.dot(enc_in.astype(jnp.bfloat16), w_enc_ref[...],
                preferred_element_type=jnp.float32)
        + b_enc_ref[...]
    )                                                     # (TN, HE) f32

    # dae hidden layer on h = [inp, ctx, std]: fused K=HE bf16 matmul,
    # the std column handled as a VPU rank-1 add.
    pre1 = (
        jnp.dot(enc.astype(jnp.bfloat16), w1_ref[...],
                preferred_element_type=jnp.float32)
        + std * w1_std_ref[...]
        + b1_ref[...]
    )
    hid = jnp.tanh(pre1)                                  # (TN, HP) f32

    # dae.fc (no output nonlinearity); padded output lanes are exactly 0.
    g = (
        jnp.dot(hid.astype(jnp.bfloat16), w2_ref[...],
                preferred_element_type=jnp.float32)
        + b2_ref[...]
    )                                                     # (TN, DO) f32

    # mse_loss(std*g, -eps): lane-dense diff (padded lanes/rows contribute exactly 0),
    # then a sublane-reduced (8, DO) partial sum — no scalar broadcast.
    eps_pad = jnp.concatenate(
        [eps, jnp.zeros((tn, d_out_pad - d_in), jnp.float32)], axis=-1)
    diff = std * g + eps_pad                              # (TN, DO)
    sq = diff * diff
    part = sq.reshape(tn // 8, 8, d_out_pad).sum(axis=0)  # (8, DO) elementwise vreg adds
    psum_ref[...] = part.reshape(1, 8, d_out_pad)


# ------------------------------ Wrapper ------------------------------------

def _pack_slab(x, context, std, eps, d_in, d_ctx, ke, n_pad):
    """One fused concatenate+pad: single HBM write of the streamed slab."""
    B, S, _ = x.shape
    N = B * S
    f32 = jnp.float32
    x2 = x.reshape(N, d_in).astype(f32)
    # expand_tensor(context, sample_size=S, do_unsqueeze=False)
    ctx2 = jnp.broadcast_to(context.astype(f32), (B, S, d_ctx)).reshape(N, d_ctx)
    std2 = std.reshape(N, 1).astype(f32)
    eps2 = eps.reshape(N, d_in).astype(f32)
    pad_a = jnp.zeros((N, ke - d_in - d_ctx), f32)
    pad_b = jnp.zeros((N, ke - d_in), f32)
    slab = jnp.concatenate([x2, ctx2, pad_a, eps2, pad_b, std2], axis=-1)  # (N, 2*ke+1)
    if n_pad > N:
        slab = jnp.pad(slab, ((0, n_pad - N), (0, 0)))
    return slab


def _pack_params(p, d_in, d_ctx, h, ke, he, hp, do):
    f32, bf16 = jnp.float32, jnp.bfloat16

    w_enc = jnp.zeros((ke, he), f32)
    w_enc = w_enc.at[0:d_in, 0:h].set(p["w_inp"])
    w_enc = w_enc.at[d_in:d_in + d_ctx, h:2 * h].set(p["w_ctx"])

    b_enc = jnp.zeros((1, he), f32)
    b_enc = b_enc.at[0, 0:h].set(p["b_inp"][0])
    b_enc = b_enc.at[0, h:2 * h].set(p["b_ctx"][0])

    w1 = jnp.zeros((he, hp), f32)
    w1 = w1.at[0:h, 0:h].set(p["w1_inp"])
    w1 = w1.at[h:2 * h, 0:h].set(p["w1_ctx"])

    w1_std = jnp.zeros((1, hp), f32).at[0, 0:h].set(p["w1_std"][0])
    b1 = jnp.zeros((1, hp), f32).at[0, 0:h].set(p["b1"][0])

    w2 = jnp.zeros((hp, do), f32).at[0:h, 0:d_in].set(p["w2"])
    b2 = jnp.zeros((1, do), f32).at[0, 0:d_in].set(p["b2"][0])

    return dict(w_enc=w_enc.astype(bf16), b_enc=b_enc,
                w1=w1.astype(bf16), w1_std=w1_std, b1=b1,
                w2=w2.astype(bf16), b2=b2)


def conditional_ardae_forward(x, context, std, eps, params, *, h_dim, row_tile=4096):
    """x: (B, S, D_in), context: (B, 1, D_ctx), std: (B, S, 1), eps: (B, S, D_in)."""
    B, S, d_in = x.shape
    d_ctx = context.shape[-1]
    N = B * S

    # Packed layout constants.
    ke = _round_up(d_in + d_ctx, 8)        # encoder contraction dim (zero-padded)
    w_slab = 2 * ke + 1                    # true slab payload width (no 128 padding)
    he = _round_up(2 * h_dim, 128)         # fused encoder output width [inp|ctx]
    hp = _round_up(h_dim, 128)             # dae hidden width
    do = _round_up(d_in, 128)              # lane-dense output width

    # Row tiling: big tiles to beat per-step overhead, but always >= 2 grid steps
    # so the "parallel" axis can split across both v7x TensorCores.
    tn = min(row_tile, _round_up(N, 8))
    n_pad = _round_up(N, tn)
    if n_pad // tn == 1 and N > 8:
        tn = _round_up((N + 1) // 2, 8)
        n_pad = _round_up(N, tn)
    num_tiles = n_pad // tn

    slab = _pack_slab(x, context, std, eps, d_in, d_ctx, ke, n_pad)
    kp = _pack_params(params, d_in, d_ctx, h_dim, ke, he, hp, do)

    kernel = functools.partial(_ardae_fwd_kernel, d_in=d_in, ke=ke, d_out_pad=do)

    const = lambda i: (0, 0)  # resident weights: same block every grid step
    grid_spec = pltpu.PrefetchScalarGridSpec(
        num_scalar_prefetch=0,
        grid=(num_tiles,),
        in_specs=[
            pl.BlockSpec((tn, w_slab), lambda i: (i, 0)),   # streamed packed slab
            pl.BlockSpec((ke, he), const),                  # w_enc (bf16)
            pl.BlockSpec((1, he), const),                   # b_enc
            pl.BlockSpec((he, hp), const),                  # w1   (bf16)
            pl.BlockSpec((1, hp), const),                   # w1_std
            pl.BlockSpec((1, hp), const),                   # b1
            pl.BlockSpec((hp, do), const),                  # w2   (bf16)
            pl.BlockSpec((1, do), const),                   # b2
        ],
        out_specs=pl.BlockSpec((1, 8, do), lambda i: (i, 0, 0)),
    )

    weight_bytes = 2 * (ke * he + he * hp + hp * do) + 4 * (he + 2 * hp + do)
    cost = pl.CostEstimate(
        flops=2 * n_pad * (ke * he + he * hp + hp * do),
        transcendentals=n_pad * (he + hp),
        bytes_accessed=n_pad * w_slab * 4 + weight_bytes + num_tiles * 8 * do * 4,
    )

    partial_sums = pl.pallas_call(
        kernel,
        grid_spec=grid_spec,
        out_shape=jax.ShapeDtypeStruct((num_tiles, 8, do), jnp.float32),
        compiler_params=pltpu.CompilerParams(
            dimension_semantics=("parallel",),
            vmem_limit_bytes=48 * 1024 * 1024,
        ),
        cost_estimate=cost,
    )(slab, kp["w_enc"], kp["b_enc"], kp["w1"], kp["w1_std"], kp["b1"],
      kp["w2"], kp["b2"])

    # mean over the true (unpadded) N * D_in elements; padded contributions are 0.
    loss = jnp.sum(partial_sums) / (N * d_in)
    return None, loss


# ------------------------- Deterministic params -----------------------------

def init_params(key, input_dim, context_dim, h_dim):
    ks = jax.random.split(key, 8)

    def linear(k, fan_in, fan_out):
        bound = 1.0 / np.sqrt(fan_in)
        kw, kb = jax.random.split(k)
        w = jax.random.uniform(kw, (fan_in, fan_out), jnp.float32, -bound, bound)
        b = jax.random.uniform(kb, (1, fan_out), jnp.float32, -bound, bound)
        return w, b

    # inp_encode: Linear(input_dim, h_dim), ctx_encode: Linear(context_dim, h_dim)
    w_inp, b_inp = linear(ks[0], input_dim, h_dim)
    w_ctx, b_ctx = linear(ks[1], context_dim, h_dim)

    # dae hidden layer: Linear(2*h_dim + 1, h_dim), split along its input axis into
    # the [inp | ctx | std] blocks so the kernel can skip the concat.
    w1_full, b1 = linear(ks[2], 2 * h_dim + 1, h_dim)
    w1_inp = w1_full[:h_dim, :]
    w1_ctx = w1_full[h_dim:2 * h_dim, :]
    w1_std = w1_full[2 * h_dim:, :]                  # (1, h_dim)

    # dae.fc: Linear(h_dim, input_dim)
    w2, b2 = linear(ks[3], h_dim, input_dim)

    return dict(
        w_inp=w_inp, b_inp=b_inp,
        w_ctx=w_ctx, b_ctx=b_ctx,
        w1_inp=w1_inp, w1_ctx=w1_ctx, w1_std=w1_std, b1=b1,
        w2=w2, b2=b2,
    )


# ----------------------------- Pure-JAX ref ---------------------------------

def _ref_forward(x, context, std, eps, p):
    B, S, D_in = x.shape
    N = B * S
    x2 = x.reshape(N, D_in)
    ctx2 = jnp.broadcast_to(context, (B, S, context.shape[-1])).reshape(N, -1)
    std2 = std.reshape(N, 1)
    eps2 = eps.reshape(N, D_in)
    x_bar = x2 + std2 * eps2
    inp = jnp.tanh(x_bar @ p["w_inp"] + p["b_inp"])
    ctx = jnp.tanh(ctx2 @ p["w_ctx"] + p["b_ctx"])
    h = jnp.concatenate([inp, ctx, std2], axis=1)
    w1 = jnp.concatenate([p["w1_inp"], p["w1_ctx"], p["w1_std"]], axis=0)
    hid = jnp.tanh(h @ w1 + p["b1"])
    g = hid @ p["w2"] + p["b2"]
    return jnp.mean((std2 * g + eps2) ** 2)


# --------------------------------- Main --------------------------------------

if __name__ == "__main__":
    B, S = 2, 8
    input_dim, context_dim, h_dim = 2, 2, 32

    key = jax.random.PRNGKey(0)
    k_par, k_x, k_c, k_s, k_e = jax.random.split(key, 5)

    params = init_params(k_par, input_dim, context_dim, h_dim)

    x = jax.random.normal(k_x, (B, S, input_dim), jnp.float32)
    context = jax.random.normal(k_c, (B, 1, context_dim), jnp.float32)
    std = 0.1 + 0.05 * jax.random.uniform(k_s, (B, S, 1), jnp.float32)
    # TODO(synk): eps uses JAX PRNG (torch.randn_like has a different RNG stream);
    # it is passed in so the kernel math matches the torch forward exactly.
    eps = jax.random.normal(k_e, (B, S, input_dim), jnp.float32)

    fwd = jax.jit(functools.partial(conditional_ardae_forward, h_dim=h_dim))
    _, loss = fwd(x, context, std, eps, params)
    loss = jax.block_until_ready(loss)

    ref = _ref_forward(x, context, std, eps, params)
    assert np.isfinite(float(loss))
    # Tolerance loosened vs f32 reference because matmul operands are bf16 in-kernel.
    np.testing.assert_allclose(np.asarray(loss), np.asarray(ref), rtol=2e-2, atol=2e-2)

    print("KERNEL_OK")
</pallas_src>

<mosaic_0001>
module attributes {stable_mosaic.version = 11 : i64} {
  func.func @_ardae_fwd_kernel(%arg0: i32, %arg1: memref<8x17xf32, #tpu.memory_space<vmem>>, %arg2: memref<8x128xbf16, #tpu.memory_space<vmem>>, %arg3: memref<1x128xf32, #tpu.memory_space<vmem>>, %arg4: memref<128x128xbf16, #tpu.memory_space<vmem>>, %arg5: memref<1x128xf32, #tpu.memory_space<vmem>>, %arg6: memref<1x128xf32, #tpu.memory_space<vmem>>, %arg7: memref<128x128xbf16, #tpu.memory_space<vmem>>, %arg8: memref<1x128xf32, #tpu.memory_space<vmem>>, %arg9: memref<1x8x128xf32, #tpu.memory_space<vmem>>) attributes {dimension_semantics = [#tpu.dimension_semantics<parallel>], iteration_bounds = array<i64: 2>, scalar_prefetch = 0 : i64, scratch_operands = 0 : i64, tpu.core_type = #tpu.core_type<tc>, window_params = [{transform_indices = @transform_0, window_bounds = array<i64: 8, 17>}, {pipeline_mode = #tpu.pipeline_mode<synchronous>, transform_indices = @transform_1, window_bounds = array<i64: 8, 128>}, {pipeline_mode = #tpu.pipeline_mode<synchronous>, transform_indices = @transform_2, window_bounds = array<i64: 1, 128>}, {pipeline_mode = #tpu.pipeline_mode<synchronous>, transform_indices = @transform_3, window_bounds = array<i64: 128, 128>}, {pipeline_mode = #tpu.pipeline_mode<synchronous>, transform_indices = @transform_4, window_bounds = array<i64: 1, 128>}, {pipeline_mode = #tpu.pipeline_mode<synchronous>, transform_indices = @transform_5, window_bounds = array<i64: 1, 128>}, {pipeline_mode = #tpu.pipeline_mode<synchronous>, transform_indices = @transform_6, window_bounds = array<i64: 128, 128>}, {pipeline_mode = #tpu.pipeline_mode<synchronous>, transform_indices = @transform_7, window_bounds = array<i64: 1, 128>}, {transform_indices = @transform_8, window_bounds = array<i64: 1, 8, 128>}]} {
    %c0 = arith.constant 0 : index
    %c0_0 = arith.constant 0 : index
    %0 = vector.load %arg1[%c0, %c0_0] : memref<8x17xf32, #tpu.memory_space<vmem>>, vector<8x17xf32>
    %1 = vector.extract_strided_slice %0 {offsets = [0, 16], sizes = [8, 1], strides = [1, 1]} : vector<8x17xf32> to vector<8x1xf32>
    %2 = vector.extract_strided_slice %0 {offsets = [0, 8], sizes = [8, 2], strides = [1, 1]} : vector<8x17xf32> to vector<8x2xf32>
    %3 = vector.extract_strided_slice %0 {offsets = [0, 0], sizes = [8, 8], strides = [1, 1]} : vector<8x17xf32> to vector<8x8xf32>
    %4 = vector.extract_strided_slice %0 {offsets = [0, 8], sizes = [8, 8], strides = [1, 1]} : vector<8x17xf32> to vector<8x8xf32>
    %5 = vector.broadcast %1 : vector<8x1xf32> to vector<8x8xf32>
    %6 = arith.mulf %5, %4 : vector<8x8xf32>
    %7 = arith.addf %3, %6 : vector<8x8xf32>
    %8 = arith.truncf %7 : vector<8x8xf32> to vector<8x8xbf16>
    %c0_1 = arith.constant 0 : index
    %c0_2 = arith.constant 0 : index
    %9 = vector.load %arg2[%c0_1, %c0_2] : memref<8x128xbf16, #tpu.memory_space<vmem>>, vector<8x128xbf16>
    %cst = arith.constant dense<0.000000e+00> : vector<8x128xf32>
    %10 = tpu.matmul %8, %9, %cst {dimension_numbers = #tpu.dot_dimension_numbers<[1], [0], [0], [1], [0, 0, 1, 1], [], []>} : vector<8x8xbf16>, vector<8x128xbf16>, vector<8x128xf32> -> vector<8x128xf32>
    %c0_3 = arith.constant 0 : index
    %c0_4 = arith.constant 0 : index
    %11 = vector.load %arg3[%c0_3, %c0_4] : memref<1x128xf32, #tpu.memory_space<vmem>>, vector<1x128xf32>
    %12 = vector.broadcast %11 : vector<1x128xf32> to vector<8x128xf32>
    %13 = arith.addf %10, %12 : vector<8x128xf32>
    %14 = math.tanh %13 : vector<8x128xf32>
    %15 = arith.truncf %14 : vector<8x128xf32> to vector<8x128xbf16>
    %c0_5 = arith.constant 0 : index
    %c0_6 = arith.constant 0 : index
    %16 = vector.load %arg4[%c0_5, %c0_6] : memref<128x128xbf16, #tpu.memory_space<vmem>>, vector<128x128xbf16>
    %cst_7 = arith.constant dense<0.000000e+00> : vector<8x128xf32>
    %17 = tpu.matmul %15, %16, %cst_7 {dimension_numbers = #tpu.dot_dimension_numbers<[1], [0], [0], [1], [0, 0, 1, 1], [], []>} : vector<8x128xbf16>, vector<128x128xbf16>, vector<8x128xf32> -> vector<8x128xf32>
    %c0_8 = arith.constant 0 : index
    %c0_9 = arith.constant 0 : index
    %18 = vector.load %arg5[%c0_8, %c0_9] : memref<1x128xf32, #tpu.memory_space<vmem>>, vector<1x128xf32>
    %19 = vector.broadcast %1 : vector<8x1xf32> to vector<8x128xf32>
    %20 = vector.broadcast %18 : vector<1x128xf32> to vector<8x128xf32>
    %21 = arith.mulf %19, %20 : vector<8x128xf32>
    %22 = arith.addf %17, %21 : vector<8x128xf32>
    %c0_10 = arith.constant 0 : index
    %c0_11 = arith.constant 0 : index
    %23 = vector.load %arg6[%c0_10, %c0_11] : memref<1x128xf32, #tpu.memory_space<vmem>>, vector<1x128xf32>
    %24 = vector.broadcast %23 : vector<1x128xf32> to vector<8x128xf32>
    %25 = arith.addf %22, %24 : vector<8x128xf32>
    %26 = math.tanh %25 : vector<8x128xf32>
    %27 = arith.truncf %26 : vector<8x128xf32> to vector<8x128xbf16>
    %c0_12 = arith.constant 0 : index
    %c0_13 = arith.constant 0 : index
    %28 = vector.load %arg7[%c0_12, %c0_13] : memref<128x128xbf16, #tpu.memory_space<vmem>>, vector<128x128xbf16>
    %cst_14 = arith.constant dense<0.000000e+00> : vector<8x128xf32>
    %29 = tpu.matmul %27, %28, %cst_14 {dimension_numbers = #tpu.dot_dimension_numbers<[1], [0], [0], [1], [0, 0, 1, 1], [], []>} : vector<8x128xbf16>, vector<128x128xbf16>, vector<8x128xf32> -> vector<8x128xf32>
    %c0_15 = arith.constant 0 : index
    %c0_16 = arith.constant 0 : index
    %30 = vector.load %arg8[%c0_15, %c0_16] : memref<1x128xf32, #tpu.memory_space<vmem>>, vector<1x128xf32>
    %31 = vector.broadcast %30 : vector<1x128xf32> to vector<8x128xf32>
    %32 = arith.addf %29, %31 : vector<8x128xf32>
    %cst_17 = arith.constant 0.000000e+00 : f32
    %33 = vector.broadcast %cst_17 : f32 to vector<8x126xf32>
    %34 = tpu.concatenate %2, %33 in 1 : vector<8x2xf32>, vector<8x126xf32> -> vector<8x128xf32>
    %35 = vector.broadcast %1 : vector<8x1xf32> to vector<8x128xf32>
    %36 = arith.mulf %35, %32 : vector<8x128xf32>
    %37 = arith.addf %36, %34 : vector<8x128xf32>
    %38 = arith.mulf %37, %37 : vector<8x128xf32>
    %39 = vector.shape_cast %38 : vector<8x128xf32> to vector<1x8x128xf32>
    %cst_18 = arith.constant dense<0.000000e+00> : vector<8x128xf32>
    %40 = vector.multi_reduction <add>, %39, %cst_18 [0] : vector<1x8x128xf32> to vector<8x128xf32>
    %41 = vector.shape_cast %40 : vector<8x128xf32> to vector<1x8x128xf32>
    %c0_19 = arith.constant 0 : index
    %c0_20 = arith.constant 0 : index
    %c0_21 = arith.constant 0 : index
    %42 = vector.load %arg9[%c0_19, %c0_20, %c0_21] : memref<1x8x128xf32, #tpu.memory_space<vmem>>, vector<1x8x128xf32>
    tpu.vector_store %arg9[%c0_19, %c0_20, %c0_21], %41 {strides = array<i32>} : memref<1x8x128xf32, #tpu.memory_space<vmem>>, vector<1x8x128xf32>,
    return
  }
  func.func @transform_0(%arg0: i32) -> (i32, i32) {
    %c0_i32 = arith.constant 0 : i32
    %c0_i32_0 = arith.constant 0 : i32
    return %arg0, %c0_i32 : i32, i32
  }
  func.func @transform_1(%arg0: i32) -> (i32, i32) {
    %c0_i32 = arith.constant 0 : i32
    %c0_i32_0 = arith.constant 0 : i32
    %c0_i32_1 = arith.constant 0 : i32
    return %c0_i32, %c0_i32_0 : i32, i32
  }
  func.func @transform_2(%arg0: i32) -> (i32, i32) {
    %c0_i32 = arith.constant 0 : i32
    %c0_i32_0 = arith.constant 0 : i32
    %c0_i32_1 = arith.constant 0 : i32
    return %c0_i32, %c0_i32_0 : i32, i32
  }
  func.func @transform_3(%arg0: i32) -> (i32, i32) {
    %c0_i32 = arith.constant 0 : i32
    %c0_i32_0 = arith.constant 0 : i32
    %c0_i32_1 = arith.constant 0 : i32
    return %c0_i32, %c0_i32_0 : i32, i32
  }
  func.func @transform_4(%arg0: i32) -> (i32, i32) {
    %c0_i32 = arith.constant 0 : i32
    %c0_i32_0 = arith.constant 0 : i32
    %c0_i32_1 = arith.constant 0 : i32
    return %c0_i32, %c0_i32_0 : i32, i32
  }
  func.func @transform_5(%arg0: i32) -> (i32, i32) {
    %c0_i32 = arith.constant 0 : i32
    %c0_i32_0 = arith.constant 0 : i32
    %c0_i32_1 = arith.constant 0 : i32
    return %c0_i32, %c0_i32_0 : i32, i32
  }
  func.func @transform_6(%arg0: i32) -> (i32, i32) {
    %c0_i32 = arith.constant 0 : i32
    %c0_i32_0 = arith.constant 0 : i32
    %c0_i32_1 = arith.constant 0 : i32
    return %c0_i32, %c0_i32_0 : i32, i32
  }
  func.func @transform_7(%arg0: i32) -> (i32, i32) {
    %c0_i32 = arith.constant 0 : i32
    %c0_i32_0 = arith.constant 0 : i32
    %c0_i32_1 = arith.constant 0 : i32
    return %c0_i32, %c0_i32_0 : i32, i32
  }
  func.func @transform_8(%arg0: i32) -> (i32, i32, i32) {
    %c0_i32 = arith.constant 0 : i32
    %c0_i32_0 = arith.constant 0 : i32
    %c0_i32_1 = arith.constant 0 : i32
    return %arg0, %c0_i32, %c0_i32_0 : i32, i32, i32
  }
}

</mosaic_0001>

<bundles_post_ra>
// kernel: conditional_ardae_forward.1
= control target key start
LH: loop header
LB: loop body
LE: loop exit
PB: predicated region body
PF: predicated region fallthrough
CT: control target
= control target key end

     0   :  { %s855_s27 = smov 0   ;;  %s970_s0 = inlined_call_operand.vmem [shape: f32[16,17], index: 0, kind: input, shape index: {}]   ;;  %s971_s1 = inlined_call_operand.vmem [shape: bf16[8,128], index: 1, kind: input, shape index: {}]   ;;  %s972_s2 = inlined_call_operand.vmem [shape: f32[1,128], index: 2, kind: input, shape index: {}]   ;;  %s973_s3 = inlined_call_operand.vmem [shape: bf16[128,128], index: 3, kind: input, shape index: {}]   ;;  %s974_s4 = inlined_call_operand.vmem [shape: f32[1,128], index: 4, kind: input, shape index: {}]   ;;  %s975_s5 = inlined_call_operand.vmem [shape: f32[1,128], index: 5, kind: input, shape index: {}]   ;;  %s976_s6 = inlined_call_operand.vmem [shape: bf16[128,128], index: 6, kind: input, shape index: {}]   ;;  %s977_s7 = inlined_call_operand.vmem [shape: f32[1,128], index: 7, kind: input, shape index: {}]   ;;  %s978_s8 = inlined_call_operand.vmem [shape: f32[2,8,128], index: 8, kind: output, shape index: {}]  }
   0x1 LB: > { %s669_s28 = sadd.s32 4294967295, %s804_s27   ;;  %p673_p0 = scmp.ge.s32.totalorder %s804_s27, 1  ;;  %s804_s27 = sphi %s855_s27, %s18_s27  }
   0x2   : > { %p261_p1 = scmp.lt.s32.totalorder %s804_s27, 3 }
   0x4   : > { %p262_p2 = pnand %p673_p0, %p261_p1 }
   0x5   : > { %p293_p3 = scmp.lt.s32.totalorder (!%p262_p2), %s669_s28, 1  ;;  %v806_v0 = vmov (!%p262_p2), 16   ;;  %s807_s11 = smov (!%p262_p2), 120   ;;  %v315_v2 = vld [vmem:[%s971_s1] sm:$0xf] (!%p262_p2)  ;;  %vm327_vm0 = vcmask (!%p262_p2), 1043456  }
   0x6   : > { %265 = sbr.rel (%p262_p2) target bundleno = 943 (0x3af), region = 52  ;;  %777 = vset.pattern.permute.xlu0 (!%p262_p2), %v806_v0  ;;  %v808_v3 = vmov (!%p262_p2), 0.0   ;;  %v329_v4 = vsel (!%p262_p2), %vm327_vm0, %v315_v2, 0  ;;  %vm809_vm1 = vmmov (!%p262_p2), 0   ;;  %v778_v5 = vld [vmem:[%s973_s3] sm:$0xff] (!%p262_p2)   ;;  %v779_v6 = vld [vmem:[%s973_s3 + $0x8] sm:$0xff] (!%p262_p2)  }
   0x7   : > { %719 = vmatprep.subr.bf16.mxu0 (!%p262_p2), %v808_v3  ;;  %725 = vmatprep.subr.bf16.mxu1 (!%p262_p2), %v808_v3  ;;  %v780_v8 = vld [vmem:[%s973_s3 + $0x10] sm:$0xff] (!%p262_p2)   ;;  %v781_v10 = vld [vmem:[%s973_s3 + $0x18] sm:$0xff] (!%p262_p2)   ;;  %vm323_vm2 = vcmask (!%p262_p2), 64512   ;;  %v782_v14 = vld [vmem:[%s973_s3 + $0x20] sm:$0xff] (!%p262_p2)   ;;  %vm609_vm3 = vcmask (!%p262_p2), 15360  }
   0x8   : > { %720 = vmatpush3.bf16.msra.mxu0 (!%p262_p2), %v329_v4  ;;  %721 = vmatprep.mubr.msk.bf16.mxu0 (!%p262_p2), %vm809_vm1, %v808_v3  ;;  %v783_v15 = vld [vmem:[%s973_s3 + $0x28] sm:$0xff] (!%p262_p2)   ;;  %v784_v16 = vld [vmem:[%s973_s3 + $0x30] sm:$0xff] (!%p262_p2)   ;;  %v785_v17 = vld [vmem:[%s973_s3 + $0x38] sm:$0xff] (!%p262_p2)  }
   0x9   : > { %745 = vmatprep.subr.bf16.mxu0 (!%p262_p2), %v808_v3  ;;  %741 = vmatprep.mubr.msk.bf16.mxu1 (!%p262_p2), %vm809_vm1, %v808_v3  ;;  %v786_v18 = vld [vmem:[%s976_s6] sm:$0xff] (!%p262_p2)   ;;  %v787_v19 = vld [vmem:[%s976_s6 + $0x8] sm:$0xff] (!%p262_p2)   ;;  %v788_v20 = vld [vmem:[%s976_s6 + $0x10] sm:$0xff] (!%p262_p2)  }
   0xa   : > { %726 = vmatpush3.bf16.msra.mxu1 (!%p262_p2), %v778_v5  ;;  %v789_v21 = vld [vmem:[%s976_s6 + $0x18] sm:$0xff] (!%p262_p2)   ;;  %v676_v22 = vld [vmem:[%s972_s2] ss:$0 sm:$0xff] (!%p262_p2)  ;;  %v791_v31 = vld [vmem:[%s976_s6 + $0x28] sm:$0xff] (!%p262_p2)  }
   0xb   : > { %727 = vmatprep.subr.bf16.mxu1 (!%p262_p2), %v808_v3  ;;  %v790_v30 = vld [vmem:[%s976_s6 + $0x20] sm:$0xff] (!%p262_p2)   ;;  %v792_v32 = vld [vmem:[%s976_s6 + $0x30] sm:$0xff] (!%p262_p2)   ;;  %v793_v33 = vld [vmem:[%s976_s6 + $0x38] sm:$0xff] (!%p262_p2)  }
   0xc   : > { %v678_v34 = vld [vmem:[%s974_s4] ss:$0 sm:$0xff] (!%p262_p2) }
   0xd   : > { %s980_s28 = smov (!%p293_p3, %s669_s28), 1  ;;  %v687_v37 = vld [vmem:[%s975_s5] ss:$0 sm:$0xff] }
   0xe   : > { %s674_s29 = sshll.u32 %s980_s28, 3  ;;  %728 = vmatpush3.bf16.msra.mxu1 %v779_v6  ;;  %v688_v45 = vld [vmem:[%s977_s7] ss:$0 sm:$0xff] }
   0xf   : > { %s296_s10 = scalar_lea.vmem %s970_s0, %s674_s29  ;;  %729 = vmatprep.subr.bf16.mxu1 %v808_v3  ;;  %s300_s18 = scalar_lea.vmem %s978_s8, %s674_s29 }
  0x10   : > { %v302_v1 = vld [vmem:[%s296_s10] sm:$0xff] }
  0x11   : > { %305 = vperm.xlu0 %777, %v302_v1   ;;  %606 = vrot.lane.b32.xlu1 %v302_v1, %s807_s11 }
  0x12   : > { %730 = vmatpush3.bf16.msra.mxu1 %v780_v8 }
  0x13   : > { %731 = vmatprep.subr.bf16.mxu1 %v808_v3 }
  0x16   : > { %732 = vmatpush3.bf16.msra.mxu1 %v781_v10 }
  0x17   : > { %733 = vmatprep.subr.bf16.mxu1 %v808_v3 }
  0x1a   : > { %734 = vmatpush3.bf16.msra.mxu1 %v782_v14 }
  0x1b   : > { %735 = vmatprep.subr.bf16.mxu1 %v808_v3 }
  0x1e   : > { %736 = vmatpush3.bf16.msra.mxu1 %v783_v15 }
  0x1f   : > { %737 = vmatprep.subr.bf16.mxu1 %v808_v3 }
  0x22   : > { %738 = vmatpush3.bf16.msra.mxu1 %v784_v16 }
  0x23   : > { %739 = vmatprep.subr.bf16.mxu1 %v808_v3 }
  0x26   : > { %740 = vmatpush3.bf16.msra.mxu1 %v785_v17 }
  0x83   : > { %v607_v46 = vpop.permute.xlu1 %606 }
  0x84   : > { %v610_v51 = vsel %vm609_vm3, %v607_v46, 0.0 }
  0x90   : > { %v888_v7 = vpop.permute.xlu0 %305 }
  0x91   : > { %v308_v9 = vmul.f32 %v888_v7, %v302_v1  ;;  %v396_v35 = vmul.f32 %v678_v34, %v888_v7 }
  0x93   : > { %310 = vrot.lane.b32.xlu0 %v308_v9, %s807_s11 }
 0x105   : > { %v311_v11 = vpop.permute.xlu0 %310 }
 0x106   : > { %v313_v12 = vadd.f32 %v311_v11, %v302_v1 }
 0x108   : > { %v314_v13 = vpack.c.bf16 %v313_v12, %v313_v12 }
 0x10a   : > { %722 = vmatmul.mubr.msk.bf16.vlgmr.msra.gmra.mrb[0].mxu0 %vm323_vm2, %v314_v13 }
 0x10b   : > { %761 = vmatprep.mubr.msk.bf16.mxu0 %vm809_vm1, %v808_v3  ;;  %746 = vmatpush3.bf16.msra.mxu0 %v786_v18 }
 0x10c   : > { %747 = vmatprep.subr.bf16.mxu0 %v808_v3 }
 0x10f   : > { %748 = vmatpush3.bf16.msra.mxu0 %v787_v19 }
 0x110   : > { %749 = vmatprep.subr.bf16.mxu0 %v808_v3 }
 0x113   : > { %750 = vmatpush3.bf16.msra.mxu0 %v788_v20 }
 0x114   : > { %751 = vmatprep.subr.bf16.mxu0 %v808_v3 }
 0x117   : > { %752 = vmatpush3.bf16.msra.mxu0 %v789_v21 }
 0x118   : > { %753 = vmatprep.subr.bf16.mxu0 %v808_v3 }
 0x11b   : > { %754 = vmatpush3.bf16.msra.mxu0 %v790_v30 }
 0x11c   : > { %755 = vmatprep.subr.bf16.mxu0 %v808_v3 }
 0x11f   : > { %756 = vmatpush3.bf16.msra.mxu0 %v791_v31 }
 0x120   : > { %757 = vmatprep.subr.bf16.mxu0 %v808_v3 }
 0x123   : > { %758 = vmatpush3.bf16.msra.mxu0 %v792_v32 }
 0x124   : > { %759 = vmatprep.subr.bf16.mxu0 %v808_v3 }
 0x127   : > { %760 = vmatpush3.bf16.msra.mxu0 %v793_v33 }
 0x1dd   : > { %v365_v23 = vpop.f32.mrb[0].mxu0 }
 0x1de   : > { %v366_v24 = vadd.f32 %v676_v22, %v365_v23  ;;  %v723_v25 = vpop.f32.mrb[1].mxu0 }
 0x1df   : > { %v368_v26 = vpop.f32.mrb[2].mxu0 }
 0x1e0   : > { %794 = vtanh.f32 %v366_v24  ;;  %v724_v27 = vpop.f32.mrb[3].mxu0 }
 0x1ea   : > { %v795_v28 = vpop.eup %794 }
 0x1eb   : > { %v372_v29 = vpack.c.bf16 %v795_v28, %v795_v28 }
 0x1ed   : > { %742 = vmatmul.mubr.bf16.vlgmr.msra.gmra.mrb[0].mxu1 %v372_v29 }
 0x2c0   : > { %v479_v36 = vpop.f32.mrb[0].mxu1 }
 0x2c1   : > { %v480_v38 = vadd.f32 %v479_v36, %v396_v35  ;;  %v743_v39 = vpop.f32.mrb[1].mxu1 }
 0x2c2   : > { %v482_v40 = vpop.f32.mrb[2].mxu1 }
 0x2c3   : > { %v492_v41 = vadd.f32 %v687_v37, %v480_v38  ;;  %v744_v42 = vpop.f32.mrb[3].mxu1 }
 0x2c5   : > { %796 = vtanh.f32 %v492_v41 }
 0x2cf   : > { %v797_v43 = vpop.eup %796 }
 0x2d0   : > { %v494_v44 = vpack.c.bf16 %v797_v43, %v797_v43 }
 0x2d2   : > { %762 = vmatmul.mubr.bf16.vlgmr.msra.gmra.mrb[4].mxu0 %v494_v44 }
 0x3a5   : > { %v600_v47 = vpop.f32.mrb[4].mxu0 }
 0x3a6   : > { %v601_v48 = vadd.f32 %v688_v45, %v600_v47  ;;  %v763_v49 = vpop.f32.mrb[5].mxu0 }
 0x3a7   : > { %v603_v50 = vpop.f32.mrb[6].mxu0 }
 0x3a8   : > { %v611_v52 = vmul.f32 %v601_v48, %v888_v7  ;;  %v764_v53 = vpop.f32.mrb[7].mxu0 }
 0x3aa   : > { %v612_v54 = vadd.f32 %v611_v52, %v610_v51 }
 0x3ac   : > { %v613_v55 = vmul.f32 %v612_v54, %v612_v54 }
 0x3ae   : > { %615 = vst [vmem:[%s300_s18] sm:$0xff] %v613_v55 }
 0x3af PF: > { %s18_s27 = sadd.s32 1, %s804_s27  }
 0x3b0   : > { %p15_p4 = scmp.ge.s32.totalorder %s18_s27, 4  }
 0x3b2   :  { %17 = sbr.rel (!%p15_p4) target bundleno = 1 (0x1), region = 82 }

</bundles_post_ra>
